<compile_context>
chip_gen: v6e
topology: v6e:2x2x1
jax: 0.10.0
libtpu: 0.0.40
codegen_flags: <defaults>
</compile_context>

<pallas_src>
import jax
import jax.numpy as jnp
from jax import lax
from jax.experimental import pallas as pl
from jax.experimental.pallas import tpu as pltpu


_ONEHOT_MAX_VOCAB = 2048       # above this a (T, Vw) one-hot tile stops being cheap
_ONEHOT_TILE_BYTES = 4 << 20   # budget for the in-kernel one-hot tile
_NSEM = 8                      # row DMAs kept in flight per step (fallback path)


def _round_up(x, m):
    return ((x + m - 1) // m) * m


def _vmem_capacity_bytes():
    try:
        return int(pltpu.get_tpu_info().vmem_capacity_bytes)
    except Exception:
        return 64 << 20  # conservative (v7x-class) default


# ---------------------------------------------------------------------------
# Fast path: VMEM-resident table, gather via one-hot MXU matmul
# ---------------------------------------------------------------------------
def _onehot_gather_kernel(idx_ref, w_ref, o_ref):
    """idx_ref: (T, 1) int32, already shifted by num_prepad (negative -> zero row).
    w_ref:   (Vw, D) full weight table, VMEM-resident across the whole grid.
    o_ref:   (T, D) output tile, one dense store per grid step.
    """
    t = idx_ref.shape[0]
    vw = w_ref.shape[0]
    iota = lax.broadcasted_iota(jnp.int32, (t, vw), 1)
    # Rows whose (shifted) index is negative (pre-pad range or padded tail)
    # produce an all-zero one-hot row -> zero embedding, matching the module's
    # pre-padded zero rows without ever materializing them.
    one_hot = (idx_ref[...] == iota).astype(w_ref.dtype)
    o_ref[...] = jnp.dot(
        one_hot, w_ref[...], preferred_element_type=jnp.float32
    ).astype(o_ref.dtype)


def _onehot_embedding(shifted_idx, weight, *, n, token_block, vmem_cap):
    vw, d = weight.shape
    itemsize = jnp.dtype(weight.dtype).itemsize

    # Large token blocks (few grid steps, big contiguous writebacks), but keep
    # the in-kernel one-hot tile under a fixed byte budget.
    t_cap = max(8, _ONEHOT_TILE_BYTES // max(1, vw * itemsize))
    block = min(token_block, t_cap)
    block = max(8, (block // 8) * 8)
    block = min(block, _round_up(n, 8))
    n_pad = _round_up(n, block)
    n_blocks = n_pad // block

    idx = jnp.pad(shifted_idx, (0, n_pad - n), constant_values=-1).reshape(n_pad, 1)

    table_bytes = vw * d * itemsize
    need = (
        table_bytes
        + 2 * block * d * itemsize      # double-buffered output tile
        + 2 * block * 4                 # double-buffered index tile
        + block * vw * itemsize         # one-hot tile
        + (8 << 20)                     # headroom
    )
    # Raise the scoped VMEM limit for the resident table (16/32 MiB defaults
    # on v5e/v6e are far below physical); never exceed physical capacity.
    vmem_limit = int(min(vmem_cap, max(32 << 20, need)))

    cost = pl.CostEstimate(
        flops=2 * n_pad * vw * d,
        transcendentals=0,
        bytes_accessed=int(table_bytes + n_pad * 4 + n_pad * d * itemsize),
    )

    return pl.pallas_call(
        _onehot_gather_kernel,
        out_shape=jax.ShapeDtypeStruct((n_pad, d), weight.dtype),
        grid=(n_blocks,),
        in_specs=[
            pl.BlockSpec((block, 1), lambda b: (b, 0)),
            # Full table, same block every step -> DMA'd into VMEM once and reused.
            pl.BlockSpec((vw, d), lambda b: (0, 0)),
        ],
        out_specs=pl.BlockSpec((block, d), lambda b: (b, 0)),
        compiler_params=pltpu.CompilerParams(
            dimension_semantics=("parallel",),
            vmem_limit_bytes=vmem_limit,
        ),
        cost_estimate=cost,
    )(idx, weight)


# ---------------------------------------------------------------------------
# Fallback: table stays in HBM, batched row DMAs (many in flight) per block
# ---------------------------------------------------------------------------
def _dma_gather_kernel(idx_ref, scale_ref, w_hbm, o_ref, sems):
    """idx_ref:   (T,) int32 in SMEM -- weight-row index per token (>= 0).
    scale_ref: (T, 1) weight-dtype -- 0.0 for pre-pad/padded tokens else 1.0.
    w_hbm:     (Vw, D) weight table left in HBM (memory_space=pl.ANY).
    o_ref:     (T, D) output tile in VMEM (rows DMA'd straight into it).
    sems:      (_NSEM,) DMA semaphores -> _NSEM row gathers in flight.
    """
    t_total = o_ref.shape[0]

    def _start(r, slot):
        pltpu.make_async_copy(
            w_hbm.at[pl.ds(idx_ref[r], 1), :],
            o_ref.at[pl.ds(r, 1), :],
            sems.at[slot],
        ).start()

    def _wait(r, slot):
        pltpu.make_async_copy(
            w_hbm.at[pl.ds(0, 1), :],          # src index irrelevant for wait
            o_ref.at[pl.ds(r, 1), :],
            sems.at[slot],
        ).wait()

    nprime = min(_NSEM, t_total)

    def prime(r, carry):
        _start(r, r % _NSEM)
        return carry

    lax.fori_loop(0, nprime, prime, 0, unroll=True)

    def body(r, carry):
        slot = r % _NSEM
        _wait(r, slot)

        @pl.when(r + _NSEM < t_total)
        def _():
            _start(r + _NSEM, slot)

        return carry

    lax.fori_loop(0, t_total, body, 0)

    # Zero pre-pad / invalid / padded tokens with one dense elementwise store.
    o_ref[...] = o_ref[...] * scale_ref[...].astype(o_ref.dtype)


def _dma_embedding(shifted_idx, weight, *, n, token_block):
    vw, d = weight.shape
    itemsize = jnp.dtype(weight.dtype).itemsize

    block = max(8, min(token_block, _round_up(n, 8)))
    block = (block // 8) * 8
    n_pad = _round_up(n, block)
    n_blocks = n_pad // block

    valid = (shifted_idx >= 0) & (shifted_idx < vw)
    dma_idx = jnp.clip(shifted_idx, 0, vw - 1)
    dma_idx = jnp.pad(dma_idx, (0, n_pad - n))
    scale = jnp.pad(valid.astype(weight.dtype), (0, n_pad - n)).reshape(n_pad, 1)

    cost = pl.CostEstimate(
        flops=0,
        transcendentals=0,
        bytes_accessed=int(2 * n_pad * d * itemsize + n_pad * (4 + itemsize)),
    )

    return pl.pallas_call(
        _dma_gather_kernel,
        out_shape=jax.ShapeDtypeStruct((n_pad, d), weight.dtype),
        grid=(n_blocks,),
        in_specs=[
            # Per-block index slice into SMEM (bounded SMEM even for huge seq*batch).
            pl.BlockSpec((block,), lambda b: (b,),
                         memory_space=pltpu.MemorySpace.SMEM),
            pl.BlockSpec((block, 1), lambda b: (b, 0)),
            pl.BlockSpec(memory_space=pl.ANY),       # weight stays in HBM
        ],
        out_specs=pl.BlockSpec((block, d), lambda b: (b, 0)),
        scratch_shapes=[pltpu.SemaphoreType.DMA((_NSEM,))],
        compiler_params=pltpu.CompilerParams(
            dimension_semantics=("arbitrary",),
        ),
        cost_estimate=cost,
    )(dma_idx, scale, weight)


# ---------------------------------------------------------------------------
# Public wrapper: eval-mode RawEmbedding.forward
# ---------------------------------------------------------------------------
def raw_embedding_forward(indices, weight, *, num_prepad=0, token_block=4096):
    """Eval-mode RawEmbedding.forward.

    indices: (seq, batch) int, over the TOTAL (pre-padded) index range.
    weight:  (num_embeddings - num_prepad, embedding_dim) float.
    Returns (emb, mask_dropoute=None); emb: (seq, batch, embedding_dim).
    Indices in [0, num_prepad) map to zero rows (the virtual pre-pad block).
    """
    seq, batch = indices.shape
    vw, d = weight.shape
    n = seq * batch
    itemsize = jnp.dtype(weight.dtype).itemsize
    table_bytes = vw * d * itemsize

    vmem_cap = _vmem_capacity_bytes()
    if vmem_cap <= (64 << 20):                       # v7x-class: 64 MiB VMEM
        table_budget = max(8 << 20, vmem_cap // 2 - (8 << 20))
    else:                                            # v5e / v6e: 128 MiB VMEM
        table_budget = int(vmem_cap * 0.7)

    # Shift by num_prepad in the wrapper (no O(V*D) zero-row concat).
    # TODO(synk): F.embedding raises on out-of-range indices; here negative /
    # pre-pad indices yield zero rows and indices beyond the table clamp to
    # the last row.
    flat = indices.reshape(-1).astype(jnp.int32)
    shifted = jnp.minimum(flat - num_prepad, vw - 1)

    if table_bytes <= table_budget and vw <= _ONEHOT_MAX_VOCAB:
        emb_flat = _onehot_embedding(
            shifted, weight, n=n, token_block=token_block, vmem_cap=vmem_cap
        )
    else:
        emb_flat = _dma_embedding(shifted, weight, n=n, token_block=token_block)

    emb = emb_flat[:n].reshape(seq, batch, d)
    # Module returns (emb, mask_dropoute); mask is None in eval mode.
    return emb, None


if __name__ == "__main__":
    # RawEmbedding(num_embeddings=64, embedding_dim=32), eval mode.
    num_embeddings = 64
    embedding_dim = 32
    seq, batch = 8, 2

    key = jax.random.PRNGKey(0)
    k_w, k_idx = jax.random.split(key)

    # init_weights(0.1): U(-0.1, 0.1)
    weight = jax.random.uniform(
        k_w, (num_embeddings, embedding_dim),
        dtype=jnp.float32, minval=-0.1, maxval=0.1,
    )
    indices = jax.random.randint(
        k_idx, (seq, batch), minval=0, maxval=num_embeddings, dtype=jnp.int32
    )

    # ---- num_prepad = 0 -------------------------------------------------
    emb, mask = raw_embedding_forward(indices, weight)
    emb = jax.block_until_ready(emb)
    ref = jnp.take(weight, indices, axis=0)
    assert emb.shape == (seq, batch, embedding_dim)
    assert mask is None
    assert jnp.allclose(emb, ref, atol=1e-6, rtol=1e-6), "mismatch (num_prepad=0)"

    # ---- num_prepad > 0: indices over the total range; low rows are zero --
    num_prepad = 4
    w_small = weight[: num_embeddings - num_prepad]
    idx_total = jax.random.randint(
        jax.random.PRNGKey(1), (seq, batch), 0, num_embeddings, dtype=jnp.int32
    )
    emb2, _ = raw_embedding_forward(idx_total, w_small, num_prepad=num_prepad)
    emb2 = jax.block_until_ready(emb2)
    total_w = jnp.concatenate(
        [jnp.zeros((num_prepad, embedding_dim), w_small.dtype), w_small], axis=0
    )
    ref2 = jnp.take(total_w, idx_total, axis=0)
    assert jnp.allclose(emb2, ref2, atol=1e-6, rtol=1e-6), "mismatch (num_prepad>0)"

    print("KERNEL_OK")
</pallas_src>

<mosaic_0001>
module attributes {stable_mosaic.version = 11 : i64} {
  func.func @_onehot_gather_kernel(%arg0: i32, %arg1: memref<16x1xi32, #tpu.memory_space<vmem>>, %arg2: memref<64x32xf32, #tpu.memory_space<vmem>>, %arg3: memref<16x32xf32, #tpu.memory_space<vmem>>) attributes {dimension_semantics = [#tpu.dimension_semantics<parallel>], iteration_bounds = array<i64: 1>, scalar_prefetch = 0 : i64, scratch_operands = 0 : i64, tpu.core_type = #tpu.core_type<tc>, window_params = [{transform_indices = @transform_0, window_bounds = array<i64: 16, 1>}, {pipeline_mode = #tpu.pipeline_mode<synchronous>, transform_indices = @transform_1, window_bounds = array<i64: 64, 32>}, {transform_indices = @transform_2, window_bounds = array<i64: 16, 32>}]} {
    %0 = tpu.iota {dimensions = array<i32: 1>} : vector<16x64xi32>
    %c0 = arith.constant 0 : index
    %c0_0 = arith.constant 0 : index
    %1 = vector.load %arg1[%c0, %c0_0] : memref<16x1xi32, #tpu.memory_space<vmem>>, vector<16x1xi32>
    %2 = vector.broadcast %1 : vector<16x1xi32> to vector<16x64xi32>
    %3 = arith.cmpi eq, %2, %0 : vector<16x64xi32>
    %4 = arith.extui %3 : vector<16x64xi1> to vector<16x64xi32>
    %5 = arith.sitofp %4 : vector<16x64xi32> to vector<16x64xf32>
    %c0_1 = arith.constant 0 : index
    %c0_2 = arith.constant 0 : index
    %6 = vector.load %arg2[%c0_1, %c0_2] : memref<64x32xf32, #tpu.memory_space<vmem>>, vector<64x32xf32>
    %cst = arith.constant dense<0.000000e+00> : vector<16x32xf32>
    %7 = tpu.matmul %5, %6, %cst {dimension_numbers = #tpu.dot_dimension_numbers<[1], [0], [0], [1], [0, 0, 1, 1], [], []>} : vector<16x64xf32>, vector<64x32xf32>, vector<16x32xf32> -> vector<16x32xf32>
    %c0_3 = arith.constant 0 : index
    %c0_4 = arith.constant 0 : index
    %8 = vector.load %arg3[%c0_3, %c0_4] : memref<16x32xf32, #tpu.memory_space<vmem>>, vector<16x32xf32>
    tpu.vector_store %arg3[%c0_3, %c0_4], %7 {strides = array<i32>} : memref<16x32xf32, #tpu.memory_space<vmem>>, vector<16x32xf32>,
    return
  }
  func.func @transform_0(%arg0: i32) -> (i32, i32) {
    %c0_i32 = arith.constant 0 : i32
    %c0_i32_0 = arith.constant 0 : i32
    return %arg0, %c0_i32 : i32, i32
  }
  func.func @transform_1(%arg0: i32) -> (i32, i32) {
    %c0_i32 = arith.constant 0 : i32
    %c0_i32_0 = arith.constant 0 : i32
    %c0_i32_1 = arith.constant 0 : i32
    return %c0_i32, %c0_i32_0 : i32, i32
  }
  func.func @transform_2(%arg0: i32) -> (i32, i32) {
    %c0_i32 = arith.constant 0 : i32
    %c0_i32_0 = arith.constant 0 : i32
    return %arg0, %c0_i32 : i32, i32
  }
}

</mosaic_0001>

<bundles_post_ra>
// kernel: tpu_custom_call.1
= control target key start
LH: loop header
LB: loop body
LE: loop exit
PB: predicated region body
PF: predicated region fallthrough
CT: control target
= control target key end

     0   :  { %v198_v2 = vmov 0   ;;  %s251_s0 = inlined_call_operand.vmem [shape: s32[16,1], index: 0, kind: input, shape index: {}]   ;;  %s252_s1 = inlined_call_operand.vmem [shape: f32[64,32], index: 1, kind: input, shape index: {}]   ;;  %s253_s2 = inlined_call_operand.hbm [shape: f32[16,32], index: 2, kind: output, shape index: {}]  }
   0x1   :  { %v14_v0 = vld [vmem:[%s251_s0] sm:$0xff]  ;;  %v35_v1 = vld [vmem:[%s252_s1 + $0x38] sm:$0xff]  ;;  %175 = vset.pattern.permute.xlu0 %v198_v2  ;;  %v34_v3 = vld [vmem:[%s252_s1 + $0x30] sm:$0xff] }
   0x2   :  { %151 = vmatprep.subr.mxu0 %v35_v1  ;;  %17 = vperm.xlu0 %175, %v14_v0   ;;  %v33_v4 = vld [vmem:[%s252_s1 + $0x28] sm:$0xff] }
   0x3   :  { %152 = vmatpush3.msra.mxu0 %v35_v1  ;;  %v15_v5 = vld [vmem:[%s251_s0 + $0x8] sm:$0xff] }
   0x4   :  { %153 = vmatprep.subr.mxu0 %v34_v3 }
   0x5   :  { %7 = vsyncpa [#allocation3], 0  ;;  %154 = vmatpush3.msra.mxu0 %v34_v3  ;;  %v32_v6 = vld [vmem:[%s252_s1 + $0x20] sm:$0xff]  ;;  %v31_v7 = vld [vmem:[%s252_s1 + $0x18] sm:$0xff]  ;;  %v12_v11 = vlaneseq  ;;  %vm36_vm0 = vcmask 523264   ;;  %v199_v14 = vmov 0.0  }
   0x6   :  { %155 = vmatprep.subr.mxu0 %v33_v4  ;;  %20 = vperm.xlu0 %175, %v15_v5   ;;  %v30_v8 = vld [vmem:[%s252_s1 + $0x10] sm:$0xff]  ;;  %v29_v9 = vld [vmem:[%s252_s1 + $0x8] sm:$0xff]  ;;  %v28_v10 = vld [vmem:[%s252_s1] sm:$0xff]  ;;  %s200_s28 = smov [#allocation2]   ;;  %vm118_vm3 = vcmask 261120  }
   0x7   :  { %156 = vmatpush3.msra.mxu0 %v33_v4  ;;  %v13_v12 = vand.u32 127, %v12_v11  ;;  %s126_s29 = sshll.u32 %s200_s28, 4  ;;  %s127_s29 = int_to_ptr.vmem [resolvable:$true] %s126_s29 }
   0x8   :  { %157 = vmatprep.subr.mxu0 %v32_v6  ;;  %s176_s1 = scalar_lea.vmem %s127_s29, 256  ;;  %p181_p1 = scmp.lt.s32.totalorder %s127_s29, %s127_s29 }
   0x9   :  { %158 = vmatpush3.msra.mxu0 %v32_v6  ;;  %p177_p0 = scmp.ne.s32.totalorder %s127_s29, %s176_s1  ;;  %p182_p2 = scmp.lt.s32.totalorder %s176_s1, %s176_s1 }
   0xa   :  { %159 = vmatprep.subr.mxu0 %v31_v7 }
   0xb   :  { %160 = vmatpush3.msra.mxu0 %v31_v7  ;;  %p183_p3 = por %p182_p2, %p181_p1 }
   0xc   :  { %161 = vmatprep.subr.mxu0 %v30_v8 }
   0xd   :  { %162 = vmatpush3.msra.mxu0 %v30_v8  ;;  %p184_p4 = pnand %p183_p3, %p177_p0 }
   0xe   :  { %163 = vmatprep.subr.mxu0 %v29_v9 }
   0xf   :  { %164 = vmatpush3.msra.mxu0 %v29_v9 }
  0x10   :  { %165 = vmatprep.subr.mxu0 %v28_v10 }
  0x11   :  { %166 = vmatpush3.msra.mxu0 %v28_v10 }
  0x7d   :  { %v18_v13 = vpop.permute.xlu0 %17 }
  0x7e   :  { %vm22_vm1 = vcmp.eq.s32.totalorder %v18_v13, %v13_v12 }
  0x7f   :  { %v137_v15 = vsel %vm22_vm1, 1.0, %v199_v14 }
  0x80   :  { %167 = vmatprep.mubr.msk.f32.mxu0 %vm36_vm0, %v137_v15 }
  0x81   :  { %v21_v16 = vpop.permute.xlu0 %20 }
  0x82   :  { %vm23_vm2 = vcmp.eq.s32.totalorder %v21_v16, %v13_v12 }
  0x83   :  { %v138_v17 = vsel %vm23_vm2, 1.0, %v199_v14 }
  0x84   :  { %168 = vmatmul.mubr.msk.f32.vlgmr.msra.gmra.mxu0 %vm36_vm0, %v138_v17 }
 0x144   :  { %v169_v18 = vpop.f32.mrf.mxu0 }
 0x145   :  { %120 = vst.msk [vmem:[#allocation2 + $0x8] sm:$0xff] %vm118_vm3, %v169_v18 }
 0x146   :  { %v109_v19 = vpop.f32.mrf.mxu0 }
 0x147   :  { %119 = vst.msk [vmem:[#allocation2] sm:$0xff] %vm118_vm3, %v109_v19 }
 0x148   :  { %187 = shalt.err (!%p184_p4)
}
 0x149   :  { %s201_s30 = smov 128   ;;  %s202_s3 = smov 8  }
 0x14a   :  { %132 = dma.vmem_to_hbm [thread:$0]  %s127_s29, 256, %s253_s2, [#allocation3], %s201_s30, %s201_s30, %s202_s3  }
 0x14b   :  { %196 = dma.done.wait [#allocation3], 256  }
 0x14c   :  { %197 = vsyncadd [#allocation3], 4294967040 }
 0x14d   :  { %136 = vsyncpa [#allocation3], 1 }

</bundles_post_ra>
